<compile_context>
chip_gen: v5e
topology: v5e:2x2
jax: 0.10.0
libtpu: 0.0.40
codegen_flags: <defaults>
</compile_context>

<pallas_src>
import math
import jax
import jax.numpy as jnp
from jax.experimental import pallas as pl
from jax.experimental.pallas import tpu as pltpu


def _round_up(v, m):
    return (v + m - 1) // m * m


def timefilm_kernel(xt_ref, fo_ref, w_ref, o_ref):
    # xt_ref : (tile, 4)    columns [x_even, t_even, x_odd, t_odd]   (f32)
    # fo_ref : (2, 4H)      row 0 = angular frequencies, row 1 = phase offsets
    # w_ref  : (4H, 4E)     fused bf16 weights [alphaw_e | alphaw_o | gamma_e | gamma_o]
    # o_ref  : (tile, 2E)   [out_even | out_odd]                     (f32)
    tile = xt_ref.shape[0]
    four_h = fo_ref.shape[1]
    two_h = four_h // 2
    two_e = o_ref.shape[1]
    e = two_e // 2

    x_e = xt_ref[:, 0:1]
    t_e = xt_ref[:, 1:2]
    x_o = xt_ref[:, 2:3]
    t_o = xt_ref[:, 3:4]

    # phase = t * (2*pi*k/Tmax) (+ pi/2 on the cos half); one sin() (EUP) feeds
    # sin and cos embeddings for both rows of the pair.  Elementwise stays f32.
    lane_h = jax.lax.broadcasted_iota(jnp.int32, (tile, four_h), 1)
    t_sel = jnp.where(lane_h < two_h, t_e, t_o)                       # (tile, 4H)
    phase = t_sel * fo_ref[0:1, :] + fo_ref[1:2, :]
    emb = jnp.sin(phase)                                              # (tile, 4H) f32

    # Single fused MXU push: bf16 operands, f32 accumulate.
    r = jnp.dot(emb.astype(w_ref.dtype), w_ref[...],
                preferred_element_type=jnp.float32)                   # (tile, 4E)
    alphaw = r[:, :two_e]                                             # 128-aligned slice
    gamma = r[:, two_e:]

    # Linear(1->E) + bias already folded into the matmul columns:
    #   out = x * (w*alpha) + (b*alpha + beta) = x_sel * alphaw + gamma
    lane_e = jax.lax.broadcasted_iota(jnp.int32, (tile, two_e), 1)
    x_sel = jnp.where(lane_e < e, x_e, x_o)                           # (tile, 2E)
    o_ref[...] = x_sel * alphaw + gamma


def _pick_config(block_rows):
    """Pick per-step pair-row cap and scoped-VMEM limit by TPU generation."""
    try:
        info = pltpu.get_tpu_info()
        vmem_bytes = int(getattr(info, "vmem_capacity_bytes", 64 * 1024 * 1024))
    except Exception:
        vmem_bytes = 64 * 1024 * 1024            # conservative (v7x per-TC size)
    if vmem_bytes >= 100 * 1024 * 1024:          # v5e / v6e: 128 MiB VMEM
        cap_half, vmem_limit = 8192, 96 * 1024 * 1024
    else:                                        # v7x: 64 MiB per TensorCore
        cap_half, vmem_limit = 4096, 48 * 1024 * 1024
    vmem_limit = min(vmem_limit, (vmem_bytes * 3) // 4)
    if block_rows is not None:                   # user override (original rows/step)
        cap_half = max(8, block_rows // 2)
    return cap_half, vmem_limit


def timefilm_forward(x, t, params, *, tmax=1000.0, block_rows=None,
                     mxu_dtype=jnp.bfloat16):
    """x, t: (B, T, 1) float32.  Returns (B, T, E) float32."""
    B, T, in_size = x.shape
    assert in_size == 1, "kernel specialised for input_size=1 (module default)"
    H, E = params["alpha_sin"].shape
    M = B * T

    cap_half, vmem_limit = _pick_config(block_rows)

    # ---- pack [x, t] into pair-rows and pad so tiles divide evenly ----------
    xf = x.reshape(M).astype(jnp.float32)
    tf = t.reshape(M).astype(jnp.float32)
    xt = jnp.stack([xf, tf], axis=-1)                                # (M, 2)

    half = (M + 1) // 2                                              # pair-rows
    tile_half = min(_round_up(half, 8), _round_up(cap_half, 8))
    if half >= 16:
        # guarantee >=2 grid steps so the "parallel" axis can shard across
        # both TensorCores on v7x (no cost on single-TC v5e/v6e)
        tile_half = min(tile_half, _round_up((half + 1) // 2, 8))
    half_p = _round_up(half, tile_half)
    m_pad = 2 * half_p
    if m_pad != M:
        xt = jnp.pad(xt, ((0, m_pad - M), (0, 0)))
    xt4 = xt.reshape(half_p, 4)                                      # [x_e,t_e,x_o,t_o]

    # ---- frequencies / phase offsets (cos = sin(. + pi/2)) ------------------
    k = jnp.arange(H, dtype=jnp.float32)
    freq = (2.0 * math.pi / tmax) * k                                # (H,)
    freq4 = jnp.tile(freq, 4)                                        # (4H,)
    off2 = jnp.concatenate([jnp.zeros((H,), jnp.float32),
                            jnp.full((H,), math.pi / 2.0, jnp.float32)])
    off4 = jnp.tile(off2, 2)                                         # (4H,)
    fo = jnp.stack([freq4, off4])                                    # (2, 4H)

    # ---- fold Linear(1->E) weight & bias into the harmonic weights ----------
    #   out = (x*w + b)*alpha + beta = x*(w*alpha) + (b*alpha + beta)
    a_s = params["alpha_sin"].astype(jnp.float32)
    a_c = params["alpha_cos"].astype(jnp.float32)
    b_s = params["beta_sin"].astype(jnp.float32)
    b_c = params["beta_cos"].astype(jnp.float32)
    wvec = params["w"].reshape(E).astype(jnp.float32)[None, :]       # (1, E)
    bvec = params["b"].reshape(E).astype(jnp.float32)[None, :]       # (1, E)
    aw_s, aw_c = a_s * wvec, a_c * wvec
    g_s, g_c = a_s * bvec + b_s, a_c * bvec + b_c
    z = jnp.zeros((H, E), jnp.float32)
    # LHS lanes are [sin_e | cos_e | sin_o | cos_o]; columns are
    # [alphaw_even | alphaw_odd | gamma_even | gamma_odd]
    w_fused = jnp.block([
        [aw_s, z, g_s, z],
        [aw_c, z, g_c, z],
        [z, aw_s, z, g_s],
        [z, aw_c, z, g_c],
    ]).astype(mxu_dtype)                                             # (4H, 4E)

    grid = (half_p // tile_half,)
    out = pl.pallas_call(
        timefilm_kernel,
        out_shape=jax.ShapeDtypeStruct((half_p, 2 * E), jnp.float32),
        grid_spec=pltpu.PrefetchScalarGridSpec(
            num_scalar_prefetch=0,
            grid=grid,
            in_specs=[
                # NOTE: this (tile, 4) block is lane-padded to 128 in VMEM
                # (tile*512 B per buffer); the per-generation tile caps above
                # already account for it.
                pl.BlockSpec((tile_half, 4), lambda i: (i, 0)),
                pl.BlockSpec((2, 4 * H), lambda i: (0, 0)),
                pl.BlockSpec((4 * H, 4 * E), lambda i: (0, 0)),
            ],
            out_specs=pl.BlockSpec((tile_half, 2 * E), lambda i: (i, 0)),
        ),
        compiler_params=pltpu.CompilerParams(
            dimension_semantics=("parallel",),
            vmem_limit_bytes=vmem_limit),
    )(xt4, fo, w_fused)

    # (half_p, 2E) is the row-major view of (m_pad, E): slice padding, reshape.
    return out.reshape(m_pad, E)[:M].reshape(B, T, E)


def reference_forward(x, t, params, *, tmax=1000.0):
    H, E = params["alpha_sin"].shape
    ar = jnp.arange(H, dtype=jnp.float32)[None, None, :]             # (1,1,H)
    phase = 2.0 * math.pi * ar * t / tmax                            # (B,T,H)
    sin_emb, cos_emb = jnp.sin(phase), jnp.cos(phase)
    alpha = sin_emb @ params["alpha_sin"] + cos_emb @ params["alpha_cos"]
    beta = sin_emb @ params["beta_sin"] + cos_emb @ params["beta_cos"]
    proj = x @ params["w"].T[None] + params["b"][None, None, :]
    return proj * alpha + beta


if __name__ == "__main__":
    key = jax.random.PRNGKey(0)
    B, T = 2, 64
    n_harmonics, embedding_size, input_size = 16, 64, 1
    Tmax = 1000.0

    ks = jax.random.split(key, 8)
    params = {
        "alpha_sin": jax.random.normal(ks[0], (n_harmonics, embedding_size), jnp.float32),
        "alpha_cos": jax.random.normal(ks[1], (n_harmonics, embedding_size), jnp.float32),
        "beta_sin":  jax.random.normal(ks[2], (n_harmonics, embedding_size), jnp.float32),
        "beta_cos":  jax.random.normal(ks[3], (n_harmonics, embedding_size), jnp.float32),
        # nn.Linear(1, E): weight (E, 1), bias (E,)
        "w": jax.random.normal(ks[4], (embedding_size, input_size), jnp.float32) * 0.1,
        "b": jax.random.normal(ks[5], (embedding_size,), jnp.float32) * 0.1,
    }

    x = jax.random.normal(ks[6], (B, T, input_size), jnp.float32)
    t = jax.random.uniform(ks[7], (B, T, 1), jnp.float32, minval=0.0, maxval=Tmax)

    ref = reference_forward(x, t, params, tmax=Tmax)

    # Structural check: f32 MXU path matches the reference tightly.
    out_f32 = timefilm_forward(x, t, params, tmax=Tmax, mxu_dtype=jnp.float32)
    out_f32 = jax.block_until_ready(out_f32)
    assert out_f32.shape == (B, T, embedding_size)
    assert jnp.allclose(out_f32, ref, atol=1e-3, rtol=1e-3), "f32 path mismatch"

    # Default (fast) path: bf16 MXU operands, f32 accumulate / elementwise.
    # K=64 bf16 contraction on O(1) weights -> expect ~1e-2-level error.
    out = timefilm_forward(x, t, params, tmax=Tmax)
    out = jax.block_until_ready(out)
    assert out.shape == (B, T, embedding_size)
    assert jnp.allclose(out, ref, atol=1e-1, rtol=2e-2), "bf16 path mismatch"

    print("KERNEL_OK")
</pallas_src>

<mosaic_0001>
module attributes {stable_mosaic.version = 11 : i64} {
  func.func @timefilm_kernel(%arg0: i32, %arg1: memref<32x4xf32, #tpu.memory_space<vmem>>, %arg2: memref<2x64xf32, #tpu.memory_space<vmem>>, %arg3: memref<64x256xf32, #tpu.memory_space<vmem>>, %arg4: memref<32x128xf32, #tpu.memory_space<vmem>>) attributes {dimension_semantics = [#tpu.dimension_semantics<parallel>], iteration_bounds = array<i64: 2>, scalar_prefetch = 0 : i64, scratch_operands = 0 : i64, tpu.core_type = #tpu.core_type<tc>, window_params = [{transform_indices = @transform_0, window_bounds = array<i64: 32, 4>}, {pipeline_mode = #tpu.pipeline_mode<synchronous>, transform_indices = @transform_1, window_bounds = array<i64: 2, 64>}, {pipeline_mode = #tpu.pipeline_mode<synchronous>, transform_indices = @transform_2, window_bounds = array<i64: 64, 256>}, {transform_indices = @transform_3, window_bounds = array<i64: 32, 128>}]} {
    %c0 = arith.constant 0 : index
    %c0_0 = arith.constant 0 : index
    %0 = vector.load %arg1[%c0, %c0_0] : memref<32x4xf32, #tpu.memory_space<vmem>>, vector<32x1xf32>
    %c0_1 = arith.constant 0 : index
    %c1 = arith.constant 1 : index
    %1 = vector.load %arg1[%c0_1, %c1] : memref<32x4xf32, #tpu.memory_space<vmem>>, vector<32x1xf32>
    %c0_2 = arith.constant 0 : index
    %c2 = arith.constant 2 : index
    %2 = vector.load %arg1[%c0_2, %c2] : memref<32x4xf32, #tpu.memory_space<vmem>>, vector<32x1xf32>
    %c0_3 = arith.constant 0 : index
    %c3 = arith.constant 3 : index
    %3 = vector.load %arg1[%c0_3, %c3] : memref<32x4xf32, #tpu.memory_space<vmem>>, vector<32x1xf32>
    %4 = tpu.iota {dimensions = array<i32: 1>} : vector<32x64xi32>
    %c32_i32 = arith.constant 32 : i32
    %5 = vector.broadcast %c32_i32 : i32 to vector<32x64xi32>
    %6 = arith.cmpi slt, %4, %5 : vector<32x64xi32>
    %7 = vector.shape_cast %1 : vector<32x1xf32> to vector<32x1xf32>
    %8 = vector.broadcast %7 : vector<32x1xf32> to vector<32x64xf32>
    %9 = vector.shape_cast %3 : vector<32x1xf32> to vector<32x1xf32>
    %10 = vector.broadcast %9 : vector<32x1xf32> to vector<32x64xf32>
    %11 = arith.select %6, %8, %10 : vector<32x64xi1>, vector<32x64xf32>
    %c0_4 = arith.constant 0 : index
    %c0_5 = arith.constant 0 : index
    %12 = vector.load %arg2[%c0_4, %c0_5] : memref<2x64xf32, #tpu.memory_space<vmem>>, vector<1x64xf32>
    %13 = vector.broadcast %12 : vector<1x64xf32> to vector<32x64xf32>
    %14 = arith.mulf %11, %13 : vector<32x64xf32>
    %c1_6 = arith.constant 1 : index
    %c0_7 = arith.constant 0 : index
    %15 = vector.load %arg2[%c1_6, %c0_7] : memref<2x64xf32, #tpu.memory_space<vmem>>, vector<1x64xf32>
    %16 = vector.broadcast %15 : vector<1x64xf32> to vector<32x64xf32>
    %17 = arith.addf %14, %16 : vector<32x64xf32>
    %18 = math.sin %17 : vector<32x64xf32>
    %c0_8 = arith.constant 0 : index
    %c0_9 = arith.constant 0 : index
    %19 = vector.load %arg3[%c0_8, %c0_9] : memref<64x256xf32, #tpu.memory_space<vmem>>, vector<64x256xf32>
    %cst = arith.constant dense<0.000000e+00> : vector<32x256xf32>
    %20 = tpu.matmul %18, %19, %cst {dimension_numbers = #tpu.dot_dimension_numbers<[1], [0], [0], [1], [0, 0, 1, 1], [], []>} : vector<32x64xf32>, vector<64x256xf32>, vector<32x256xf32> -> vector<32x256xf32>
    %21 = vector.extract_strided_slice %20 {offsets = [0, 0], sizes = [32, 128], strides = [1, 1]} : vector<32x256xf32> to vector<32x128xf32>
    %22 = vector.extract_strided_slice %20 {offsets = [0, 128], sizes = [32, 128], strides = [1, 1]} : vector<32x256xf32> to vector<32x128xf32>
    %23 = tpu.iota {dimensions = array<i32: 1>} : vector<32x128xi32>
    %c64_i32 = arith.constant 64 : i32
    %24 = vector.broadcast %c64_i32 : i32 to vector<32x128xi32>
    %25 = arith.cmpi slt, %23, %24 : vector<32x128xi32>
    %26 = vector.shape_cast %0 : vector<32x1xf32> to vector<32x1xf32>
    %27 = vector.broadcast %26 : vector<32x1xf32> to vector<32x128xf32>
    %28 = vector.shape_cast %2 : vector<32x1xf32> to vector<32x1xf32>
    %29 = vector.broadcast %28 : vector<32x1xf32> to vector<32x128xf32>
    %30 = arith.select %25, %27, %29 : vector<32x128xi1>, vector<32x128xf32>
    %31 = arith.mulf %30, %21 : vector<32x128xf32>
    %32 = arith.addf %31, %22 : vector<32x128xf32>
    %c0_10 = arith.constant 0 : index
    %c0_11 = arith.constant 0 : index
    %33 = vector.load %arg4[%c0_10, %c0_11] : memref<32x128xf32, #tpu.memory_space<vmem>>, vector<32x128xf32>
    tpu.vector_store %arg4[%c0_10, %c0_11], %32 {strides = array<i32>} : memref<32x128xf32, #tpu.memory_space<vmem>>, vector<32x128xf32>,
    return
  }
  func.func @transform_0(%arg0: i32) -> (i32, i32) {
    %c0_i32 = arith.constant 0 : i32
    %c0_i32_0 = arith.constant 0 : i32
    return %arg0, %c0_i32 : i32, i32
  }
  func.func @transform_1(%arg0: i32) -> (i32, i32) {
    %c0_i32 = arith.constant 0 : i32
    %c0_i32_0 = arith.constant 0 : i32
    %c0_i32_1 = arith.constant 0 : i32
    return %c0_i32, %c0_i32_0 : i32, i32
  }
  func.func @transform_2(%arg0: i32) -> (i32, i32) {
    %c0_i32 = arith.constant 0 : i32
    %c0_i32_0 = arith.constant 0 : i32
    %c0_i32_1 = arith.constant 0 : i32
    return %c0_i32, %c0_i32_0 : i32, i32
  }
  func.func @transform_3(%arg0: i32) -> (i32, i32) {
    %c0_i32 = arith.constant 0 : i32
    %c0_i32_0 = arith.constant 0 : i32
    return %arg0, %c0_i32 : i32, i32
  }
}

</mosaic_0001>

<bundles_post_ra>
// kernel: tpu_custom_call.1
= control target key start
LH: loop header
LB: loop body
LE: loop exit
PB: predicated region body
PF: predicated region fallthrough
CT: control target
= control target key end

     0   :  { %8 = vsyncpa [#allocation3], 0  ;;  %s1979_s0 = inlined_call_operand.vmem [shape: f32[64,4], index: 0, kind: input, shape index: {}]   ;;  %s1980_s1 = inlined_call_operand.vmem [shape: f32[2,64], index: 1, kind: input, shape index: {}]   ;;  %s1981_s2 = inlined_call_operand.hbm [shape: f32[64,256], index: 2, kind: input, shape index: {}]   ;;  %s1982_s3 = inlined_call_operand.hbm [shape: f32[64,128], index: 3, kind: output, shape index: {}]  }
   0x1   :  { %9 = vsyncpa [#allocation4], 0 }
   0x2   :  { %11 = vsyncpa [#allocation4 + $0x1], 0  ;;  %s1358_s12 = smov 0   ;;  %s1360_s13 = smov 0  }
   0x3   :  { %s1362_s14 = smov 0   ;;  %s1364_s15 = smov 0  }
   0x4 LB: > { %s1379_s16 = sadd.s32 4294967295, %s1321_s15   ;;  %s1094_s17 = sadd.s32 4294967294, %s1321_s15   ;;  %s1321_s15 = sphi %s1364_s15, %s2003_s15   ;;  %s1317_s14 = sphi %s1362_s14, %s2002_s14   ;;  %s1313_s13 = sphi %s1360_s13, %s2001_s13   ;;  %s1309_s12 = sphi %s1358_s12, %s2000_s12  }
   0x5   : > { %s1383_s18 = sadd.s32 1, %s1321_s15   ;;  %s92_s19 = sadd.s32 1, %s1317_s14 }
   0x6   : > { %s89_s20 = ssub.s32 %s1321_s15, %s1383_s18  ;;  %p102_p0 = scmp.ne.s32.totalorder %s1317_s14, %s1313_s13 }
   0x7   : > { %p90_p1 = scmp.eq.s32.totalorder %s89_s20, 0  ;;  %p103_p2 = scmp.eq.s32.totalorder %s1379_s16, 1 }
   0x8   : > { %p108_p3 = scmp.ne.s32.totalorder %s1313_s13, %s1309_s12  ;;  %p109_p4 = scmp.eq.s32.totalorder %s1094_s17, 1 }
   0x9   : > { %s1394_s21 = scalar_select %p90_p1, %s1317_s14, %s92_s19  }
   0xa   : > { %p1396_p5 = por %p103_p2, %p102_p0  ;;  %p1400_p6 = por %p109_p4, %p108_p3 }
   0xb   : > { %p1095_p7 = scmp.ge.s32.totalorder %s1321_s15, 1  ;;  %p116_p8 = scmp.lt.s32.totalorder %s1321_s15, 3 }
   0xc   : > { %p1159_p9 = scmp.eq.s32.totalorder %s1379_s16, 0  ;;  %s130_s26 = sshll.u32 %s1981_s2, 4  ;;  %s131_s26 = int_to_ptr.hbm [resolvable:$true] %s130_s26 }
   0xd   : > { %p117_p10 = pnand %p1095_p7, %p116_p8  ;;  %s1323_s27 = smov [#allocation2]  }
   0xe   : > { %s132_s28 = sshll.u32 %s1323_s27, 4  ;;  %s1324_s29 = smov 256   ;;  %s133_s28 = int_to_ptr.vmem [resolvable:$true] %s132_s28 }
   0xf   : > { %p1151_p11 = pneg %p117_p10  ;;  %s1325_s30 = smov 16  }
  0x10   : > { %157 = sbr.rel (%p117_p10) target bundleno = 475 (0x1db), region = 32 }
  0x11   : > { %p1152_p12 = pnand %p1159_p9, %p1151_p11 }
  0x13   : > { %1154 = dma.hbm_to_vmem [thread:$0]  (!%p1152_p12), %s131_s26, 2048, %s133_s28, [#allocation3], %s1324_s29, %s1324_s29, %s1325_s30  }
  0x15   : > { %1300 = dma.done.wait (%p1159_p9), [#allocation3], 2048  }
  0x16   : > { %1302 = vsyncadd (%p1159_p9), [#allocation3], 4294965248  ;;  %s1101_s4 = sshll.u32 %s1379_s16, 2  ;;  %v1326_v0 = vmov 1   ;;  %v1327_v4 = vmov 3   ;;  %v193_v6 = vlaneseq  ;;  %v1328_v14 = vmov 0  }
  0x17   : > { %1213 = vset.pattern.permute.xlu2 %v1326_v0  ;;  %1211 = vset.pattern.permute.xlu1 %v1326_v0  ;;  %p183_p13 = scmp.lt.s32.totalorder %s1101_s4, 7  ;;  %v1444_v9 = vld [vmem:[%s1980_s1] ss:$0 sm:$0xff]  ;;  %v1449_v10 = vld [vmem:[%s1980_s1 + $0x1] ss:$0 sm:$0xff]  ;;  %v882_v25 = vld [vmem:[#allocation2 + $0x70] sm:$0xff] }
  0x18   : > { %1209 = vset.pattern.permute.xlu0 %v1326_v0  ;;  %v1438_v8 = vand.u32 127, %v193_v6  ;;  %v883_v26 = vld [vmem:[#allocation2 + $0x78] sm:$0xff]  ;;  %v880_v27 = vld [vmem:[#allocation2 + $0x60] sm:$0xff]  ;;  %905 = vmatpush.msra.mxu0 %v882_v25  ;;  %v881_v29 = vld [vmem:[#allocation2 + $0x68] sm:$0xff]  ;;  %v1329_v31 = vmov 920167782  }
  0x19   : > { %s2005_s4 = smov (!%p183_p13, %s1101_s4), 7  ;;  %1129 = vmatpush.msra.mxu2 %v882_v25  ;;  %934 = vmatpush.msra.mxu1 %v883_v26  ;;  %v878_v30 = vld [vmem:[#allocation2 + $0x50] sm:$0xff]  ;;  %v1986_v33 = vmov 1326507024   ;;  %v879_v36 = vld [vmem:[#allocation2 + $0x58] sm:$0xff]  ;;  %v876_v41 = vld [vmem:[#allocation2 + $0x40] sm:$0xff] }
  0x1a   : > { %s1102_s5 = sshll.u32 %s2005_s4, 3  ;;  %vm195_vm0 = vcmp.lt.s32.totalorder %v1438_v8, 32  ;;  %1137 = vmatpush.msra.mxu3 %v883_v26  ;;  %906 = vmatpush.msra.mxu0 %v880_v27  ;;  %v1331_v37 = vmov 683565275   ;;  %v1332_v39 = vmov 2475754826  }
  0x1b   : > { %s1420_s8 = scalar_lea.vmem %s1979_s0, %s1102_s5  ;;  %1130 = vmatpush.msra.mxu2 %v880_v27  ;;  %935 = vmatpush.msra.mxu1 %v881_v29  ;;  %v1333_v43 = vmov 2131351028   ;;  %v1984_v46 = vmov 2102212464   ;;  %v877_v50 = vld [vmem:[#allocation2 + $0x48] sm:$0xff]  ;;  %v874_v56 = vld [vmem:[#allocation2 + $0x30] sm:$0xff] }
  0x1c   : > { %v192_v1 = vld [vmem:[%s1420_s8 + $0x18] sm:$0xff]  ;;  %v1424_v2 = vld [vmem:[%s1420_s8 + $0x10] sm:$0xff]  ;;  %v1427_v3 = vld [vmem:[%s1420_s8] sm:$0xff]  ;;  %1138 = vmatpush.msra.mxu3 %v881_v29  ;;  %907 = vmatpush.msra.mxu0 %v878_v30  ;;  %s179_s19 = sand.u32 1, %s1313_s13   ;;  %s1128_s25 = sshll.u32 %s1379_s16, 5 }
  0x1d   : > { %213 = vperm.xlu2 %1213, %v192_v1   ;;  %208 = vperm.xlu0 %1209, %v1424_v2   ;;  %v1434_v5 = vld [vmem:[%s1420_s8 + $0x8] sm:$0xff]  ;;  %v875_v60 = vld [vmem:[#allocation2 + $0x38] sm:$0xff]  ;;  %v872_v61 = vld [vmem:[#allocation2 + $0x20] sm:$0xff]  ;;  %s1100_s20 = sshll.u32 %s179_s19, 5  ;;  %s1016_s28 = scalar_lea.hbm %s1982_s3, %s1128_s25 }
  0x1e   : > { %198 = vperm.xlu1 %1211, %v1427_v3   ;;  %1131 = vmatpush.msra.mxu2 %v878_v30  ;;  %v873_v6 = vld [vmem:[#allocation2 + $0x28] sm:$0xff]  ;;  %s1933_s24 = scalar_lea.vmem [#allocation5], %s1100_s20  ;;  %s1019_s30 = sshll.u32 %s1016_s28, 4  ;;  %s1020_s30 = int_to_ptr.hbm [resolvable:$true] %s1019_s30 }
  0x1f   : > { %936 = vmatpush.msra.mxu1 %v879_v36  ;;  %1139 = vmatpush.msra.mxu3 %v879_v36  ;;  %v869_v25 = vld [vmem:[#allocation2 + $0x8] sm:$0xff]  ;;  %s1017_s29 = sshll.u32 %s1933_s24, 4  ;;  %s1005_s16 = scalar_lea.sflag [#allocation4], %s179_s19  ;;  %s1018_s29 = int_to_ptr.vmem [resolvable:$true] %s1017_s29 }
  0x20   : > { %908 = vmatpush.msra.mxu0 %v876_v41  ;;  %1132 = vmatpush.msra.mxu2 %v876_v41  ;;  %s1269_s4 = sshra.s32 %s1020_s30, 4  ;;  %s1270_s4 = int_to_ptr.hbm [resolvable:$true] %s1269_s4 }
  0x21   : > { %937 = vmatpush.msra.mxu1 %v877_v50  ;;  %1140 = vmatpush.msra.mxu3 %v877_v50  ;;  %s1271_s5 = scalar_lea.hbm %s1270_s4, 32  ;;  %p1276_p3 = scmp.lt.s32.totalorder %s1270_s4, %s1982_s3 }
  0x22   : > { %909 = vmatpush.msra.mxu0 %v874_v56  ;;  %1133 = vmatpush.msra.mxu2 %v874_v56  ;;  %p1272_p0 = scmp.ne.s32.totalorder %s1270_s4, %s1271_s5 }
  0x23   : > { %938 = vmatpush.msra.mxu1 %v875_v60  ;;  %1141 = vmatpush.msra.mxu3 %v875_v60 }
  0x24   : > { %910 = vmatpush.msra.mxu0 %v872_v61  ;;  %1134 = vmatpush.msra.mxu2 %v872_v61  ;;  %p1273_p1 = pnand %p1272_p0, %p1396_p5 }
  0x25   : > { %1214 = vset.pattern.permute.xlu2 %v1327_v4  ;;  %1210 = vset.pattern.permute.xlu0 %v1327_v4 }
  0x26   : > { %1212 = vset.pattern.permute.xlu1 %v1327_v4  ;;  %229 = vperm.xlu2 %1214, %v192_v1   ;;  %p1274_p2 = pneg %p1273_p1 }
  0x27   : > { %225 = vperm.xlu0 %1210, %v1424_v2   ;;  %217 = vperm.xlu1 %1212, %v1427_v3  }
  0x28   : > { %939 = vmatpush.msra.mxu1 %v873_v6  ;;  %1142 = vmatpush.msra.mxu3 %v873_v6 }
  0x2e   : > { %221 = vperm.xlu2 %1214, %v1434_v5  }
  0x2f   : > { %1215 = vset.pattern.permute.xlu1 %v1326_v0  ;;  %1216 = vset.pattern.permute.xlu0 %v1328_v14 }
  0x30   : > { %203 = vperm.xlu1 %1215, %v1434_v5   ;;  %957 = vperm.xlu0 %1216, %v1427_v3  }
  0x36   : > { %1218 = vset.pattern.permute.xlu2 %v1328_v14 }
  0x37   : > { %965 = vperm.xlu2 %1218, %v1424_v2  }
  0x38   : > { %1217 = vset.pattern.permute.xlu1 %v1328_v14 }
  0x39   : > { %961 = vperm.xlu1 %1217, %v1434_v5  }
  0x41   : > { %969 = vperm.xlu1 %1217, %v192_v1  }
  0x77   : > { %v214_v7 = vpop.permute.xlu2 %213 }
  0x80   : > { %v230_v11 = vpop.permute.xlu2 %229 }
  0x81   : > { %v235_v12 = vsel %vm195_vm0, %v214_v7, %v230_v11  ;;  %v870_v11 = vld [vmem:[#allocation2 + $0x10] sm:$0xff] }
  0x82   : > { %v241_v13 = vmul.f32 %v1444_v9, %v235_v12  ;;  %911 = vmatpush.msra.mxu0 %v870_v11  ;;  %1135 = vmatpush.msra.mxu2 %v870_v11 }
  0x84   : > { %v1457_v15 = vadd.f32 %v1449_v10, %v241_v13 }
  0x86   : > { %v716_v16 = vand.u32 2139095040, %v1457_v15  ;;  %v1983_v28 = vand.u32 2147483647, %v1457_v15 }
  0x88   : > { %v717_v17 = vshrl.u32 %v716_v16, 23  ;;  %v720_v42 = vand.u32 8388607, %v1983_v28  ;;  %v222_v29 = vpop.permute.xlu2 %221 }
  0x8a   : > { %v1112_v18 = vadd.s32 4294967169, %v717_v17  ;;  %v721_v62 = vor.u32 8388608, %v720_v42 }
  0x8c   : > { %v723_v19 = vadd.s32 1, %v1112_v18  ;;  %v871_v18 = vld [vmem:[#allocation2 + $0x18] sm:$0xff] }
  0x8d   : > { %940 = vmatpush.msra.mxu1 %v871_v18  ;;  %1143 = vmatpush.msra.mxu3 %v871_v18 }
  0x8e   : > { %vm724_vm1 = vcmp.gt.s32.totalorder %v723_v19, 0 }
  0x8f   : > { %v725_v20 = vsel %vm724_vm1, %v723_v19, 0  ;;  %v209_v21 = vpop.permute.xlu0 %208  ;;  %941 = vmatpush.msra.mxu1 %v869_v25  ;;  %1144 = vmatpush.msra.mxu3 %v869_v25 }
  0x90   : > { %v727_v22 = vand.u32 31, %v725_v20  ;;  %v199_v23 = vpop.permute.xlu1 %198  ;;  %v1470_v35 = vshrl.u32 %v725_v20, 5  ;;  %v868_v20 = vld [vmem:[#allocation2] sm:$0xff] }
  0x91   : > { %912 = vmatpush.msra.mxu0 %v868_v20  ;;  %1136 = vmatpush.msra.mxu2 %v868_v20 }
  0x92   : > { %v1464_v24 = vsub.s32 32, %v727_v22  ;;  %v742_v32 = vshll.u32 %v1329_v31, %v727_v22  ;;  %v730_v38 = vshll.u32 %v1331_v37, %v727_v22  ;;  %v733_v40 = vshll.u32 %v1332_v39, %v727_v22 }
  0x93   : > { %v736_v45 = vshll.u32 %v1333_v43, %v727_v22  ;;  %v739_v52 = vshll.u32 %v1984_v46, %v727_v22  ;;  %vm748_vm2 = vcmp.lt.s32.totalorder %v1470_v35, 4  ;;  %vm745_vm3 = vcmp.lt.s32.totalorder %v1470_v35, 1 }
  0x94   : > { %v743_v34 = vshrl.u32 %v1986_v33, %v1464_v24  ;;  %v734_v44 = vshrl.u32 %v1333_v43, %v1464_v24  ;;  %v737_v47 = vshrl.u32 %v1984_v46, %v1464_v24  ;;  %v731_v51 = vshrl.u32 %v1332_v39, %v1464_v24 }
  0x95   : > { %v740_v53 = vshrl.u32 %v1329_v31, %v1464_v24  ;;  %vm747_vm4 = vcmp.lt.s32.totalorder %v1470_v35, 3  ;;  %vm746_vm5 = vcmp.lt.s32.totalorder %v1470_v35, 2  ;;  %v729_v50 = vshrl.u32 %v1331_v37, %v1464_v24 }
  0x96   : > { %v744_v57 = vor.u32 %v743_v34, %v742_v32  ;;  %v1493_v63 = vor.u32 %v734_v44, %v733_v40  ;;  %v738_v0 = vor.u32 %v737_v47, %v736_v45  ;;  %v732_v12 = vor.u32 %v731_v51, %v730_v38 }
  0x97   : > { %v741_v7 = vor.u32 %v740_v53, %v739_v52 }
  0x98   : > { %v758_v13 = vsel %vm748_vm2, %v744_v57, 1326507024  ;;  %v757_v26 = vsel %vm745_vm3, %v1493_v63, %v738_v0  ;;  %v753_v34 = vsel %vm745_vm3, %v732_v12, %v1493_v63  ;;  %v750_v53 = vsel %vm748_vm2, %v738_v0, 2102212464 }
  0x99   : > { %v226_v48 = vpop.permute.xlu0 %225  ;;  %v218_v49 = vpop.permute.xlu1 %217  ;;  %v759_v27 = vsel %vm747_vm4, %v741_v7, %v758_v13  ;;  %v754_v44 = vsel %vm748_vm2, %v741_v7, 920167782  ;;  %v1553_v60 = vsel %vm747_vm4, %v1493_v63, %v750_v53 }
  0x9a   : > { %v234_v54 = vsel %vm195_vm0, %v209_v21, %v226_v48  ;;  %v232_v55 = vsel %vm195_vm0, %v199_v23, %v218_v49  ;;  %v1509_v21 = vshll.u32 %v721_v62, 8  ;;  %v760_v45 = vsel %vm746_vm5, %v757_v26, %v759_v27 }
  0x9b   : > { %v240_v58 = vmul.f32 %v1444_v9, %v234_v54  ;;  %v238_v59 = vmul.f32 %v1444_v9, %v232_v55  ;;  %v764_v54 = vand.u32 65535, %v760_v45  ;;  %v755_v56 = vsel %vm747_vm4, %v738_v0, %v754_v44 }
  0x9c   : > { %v1530_v47 = vand.u32 65535, %v1509_v21  ;;  %v1535_v51 = vshrl.u32 %v1509_v21, 16  ;;  %v765_v57 = vshrl.u32 %v760_v45, 16  ;;  %v1557_v61 = vsel %vm746_vm5, %v753_v34, %v755_v56 }
  0x9d   : > { %v1496_v1 = vadd.f32 %v1449_v10, %v240_v58  ;;  %v1499_v4 = vadd.f32 %v1449_v10, %v238_v59 }
  0x9e   : > { %v1560_v62 = vmul.u32 %v764_v54, %v1530_v47  ;;  %v1565_v7 = vmul.u32 %v765_v57, %v1530_v47  ;;  %v1568_v11 = vmul.u32 %v764_v54, %v1535_v51 }
  0x9f   : > { %v561_v16 = vand.u32 2139095040, %v1496_v1  ;;  %v251_v17 = vand.u32 2139095040, %v1499_v4  ;;  %v248_v19 = vand.u32 2147483647, %v1499_v4  ;;  %v558_v32 = vand.u32 2147483647, %v1496_v1 }
  0xa1   : > { %v562_v22 = vshrl.u32 %v561_v16, 23  ;;  %v252_v23 = vshrl.u32 %v251_v17, 23  ;;  %v255_v41 = vand.u32 8388607, %v248_v19  ;;  %v565_v52 = vand.u32 8388607, %v558_v32 }
  0xa2   : > { %v204_v30 = vpop.permute.xlu1 %203 }
  0xa3   : > { %v1109_v36 = vadd.s32 4294967169, %v562_v22  ;;  %v1103_v38 = vadd.s32 4294967169, %v252_v23  ;;  %v233_v40 = vsel %vm195_vm0, %v204_v30, %v222_v29  ;;  %v256_v55 = vor.u32 8388608, %v255_v41 }
  0xa4   : > { %v239_v42 = vmul.f32 %v1444_v9, %v233_v40  ;;  %v566_v59 = vor.u32 8388608, %v565_v52  ;;  %v1583_v41 = vmul.u32 %v765_v57, %v1535_v51 }
  0xa5   : > { %v568_v48 = vadd.s32 1, %v1109_v36  ;;  %v258_v49 = vadd.s32 1, %v1103_v38  ;;  %v1562_v6 = vshll.u32 %v256_v55, 8 }
  0xa6   : > { %v1538_v9 = vadd.f32 %v1449_v10, %v239_v42  ;;  %v1548_v10 = vsel %vm745_vm3, %v729_v50, %v732_v12  ;;  %v1580_v36 = vshll.u32 %v566_v59, 8 }
  0xa7   : > { %vm259_vm6 = vcmp.gt.s32.totalorder %v258_v49, 0  ;;  %vm569_vm7 = vcmp.gt.s32.totalorder %v568_v48, 0  ;;  %v297_v45 = vand.u32 65535, %v1562_v6  ;;  %v298_v59 = vshrl.u32 %v1562_v6, 16 }
  0xa8   : > { %v260_v24 = vsel %vm259_vm6, %v258_v49, 0  ;;  %v570_v12 = vsel %vm569_vm7, %v568_v48, 0 }
  0xa9   : > { %v262_v58 = vand.u32 31, %v260_v24  ;;  %v261_v13 = vshrl.u32 %v260_v24, 5  ;;  %v1585_v42 = vand.u32 31, %v570_v12 }
  0xab   : > { %v263_v0 = vsub.s32 32, %v262_v58  ;;  %v265_v63 = vshll.u32 %v1331_v37, %v262_v58  ;;  %v268_v16 = vshll.u32 %v1332_v39, %v262_v58  ;;  %v271_v20 = vshll.u32 %v1333_v43, %v262_v58 }
  0xac   : > { %v274_v23 = vshll.u32 %v1984_v46, %v262_v58  ;;  %v277_v26 = vshll.u32 %v1329_v31, %v262_v58  ;;  %vm280_vm8 = vcmp.lt.s32.totalorder %v261_v13, 1  ;;  %vm283_vm9 = vcmp.lt.s32.totalorder %v261_v13, 4 }
  0xad   : > { %v266_v17 = vshrl.u32 %v1332_v39, %v263_v0  ;;  %v269_v18 = vshrl.u32 %v1333_v43, %v263_v0  ;;  %v272_v22 = vshrl.u32 %v1984_v46, %v263_v0  ;;  %v275_v25 = vshrl.u32 %v1329_v31, %v263_v0 }
  0xae   : > { %v278_v27 = vshrl.u32 %v1986_v33, %v263_v0  ;;  %v264_v48 = vshrl.u32 %v1331_v37, %v263_v0  ;;  %vm282_vm10 = vcmp.lt.s32.totalorder %v261_v13, 3  ;;  %vm281_vm11 = vcmp.lt.s32.totalorder %v261_v13, 2 }
  0xaf   : > { %v267_v29 = vor.u32 %v266_v17, %v265_v63  ;;  %v270_v30 = vor.u32 %v269_v18, %v268_v16  ;;  %v273_v34 = vor.u32 %v272_v22, %v271_v20  ;;  %v276_v38 = vor.u32 %v275_v25, %v274_v23 }
  0xb0   : > { %v279_v40 = vor.u32 %v278_v27, %v277_v26  ;;  %v1592_v17 = vshrl.u32 %v570_v12, 5  ;;  %v406_v0 = vand.u32 2139095040, %v1538_v9  ;;  %v1596_v22 = vsub.s32 32, %v1585_v42 }
  0xb1   : > { %v288_v44 = vsel %vm280_vm8, %v267_v29, %v270_v30  ;;  %v285_v49 = vsel %vm283_vm9, %v273_v34, 2102212464  ;;  %v289_v50 = vsel %vm283_vm9, %v276_v38, 920167782  ;;  %v292_v53 = vsel %vm280_vm8, %v270_v30, %v273_v34 }
  0xb2   : > { %v290_v52 = vsel %vm282_vm10, %v273_v34, %v289_v50  ;;  %v293_v54 = vsel %vm283_vm9, %v279_v40, 1326507024  ;;  %v284_v55 = vsel %vm280_vm8, %v264_v48, %v267_v29  ;;  %v286_v56 = vsel %vm282_vm10, %v270_v30, %v285_v49 }
  0xb3   : > { %v291_v57 = vsel %vm281_vm11, %v288_v44, %v290_v52  ;;  %v294_v24 = vsel %vm282_vm10, %v276_v38, %v293_v54  ;;  %v1599_v23 = vsel %vm281_vm11, %v284_v55, %v286_v56  ;;  %v575_v34 = vshll.u32 %v1331_v37, %v1585_v42 }
  0xb4   : > { %v295_v58 = vsel %vm281_vm11, %v292_v53, %v294_v24  ;;  %v321_v63 = vand.u32 65535, %v291_v57  ;;  %v322_v16 = vshrl.u32 %v291_v57, 16  ;;  %v576_v54 = vshrl.u32 %v1332_v39, %v1596_v22 }
  0xb5   : > { %v299_v18 = vand.u32 65535, %v295_v58  ;;  %v300_v20 = vshrl.u32 %v295_v58, 16  ;;  %v578_v58 = vshll.u32 %v1332_v39, %v1585_v42  ;;  %vm590_vm0 = vcmp.lt.s32.totalorder %v1592_v17, 1 }
  0xb6   : > { %v324_v25 = vmul.u32 %v322_v16, %v297_v45  ;;  %v325_v26 = vmul.u32 %v321_v63, %v298_v59  ;;  %v323_v30 = vmul.u32 %v321_v63, %v297_v45  ;;  %v326_v40 = vmul.u32 %v322_v16, %v298_v59 }
  0xb7   : > { %v302_v27 = vmul.u32 %v300_v20, %v297_v45  ;;  %v303_v29 = vmul.u32 %v299_v18, %v298_v59  ;;  %v301_v12 = vmul.u32 %v299_v18, %v297_v45  ;;  %v304_v38 = vmul.u32 %v300_v20, %v298_v59 }
  0xb8   : > { %v327_v44 = vshll.u32 %v324_v25, 16  ;;  %v328_v50 = vshrl.u32 %v324_v25, 16  ;;  %v329_v52 = vshll.u32 %v325_v26, 16  ;;  %v579_v45 = vshrl.u32 %v1333_v43, %v1596_v22 }
  0xb9   : > { %v305_v48 = vshll.u32 %v302_v27, 16  ;;  %v306_v49 = vshrl.u32 %v302_v27, 16  ;;  %v307_v53 = vshll.u32 %v303_v29, 16  ;;  %v577_v16 = vor.u32 %v576_v54, %v575_v34 }
  0xba   : > { %vm331_vm12 = vc.u32 %v323_v30, %v327_v44  ;;  %v333_v13 = vadd.s32 %v327_v44, %v323_v30  ;;  %v580_v25 = vor.u32 %v579_v45, %v578_v58  ;;  %v581_v27 = vshll.u32 %v1333_v43, %v1585_v42 }
  0xbb   : > { %vm309_vm13 = vc.u32 %v301_v12, %v305_v48  ;;  %v311_v55 = vadd.s32 %v305_v48, %v301_v12  ;;  %v332_v56 = vsel %vm331_vm12, 1, %v1328_v14  ;;  %v582_v12 = vshrl.u32 %v1984_v46, %v1596_v22 }
  0xbc   : > { %v310_v57 = vsel %vm309_vm13, 1, %v1328_v14  ;;  %v334_v24 = vadd.s32 %v332_v56, %v326_v40  ;;  %vm335_vm14 = vc.u32 %v333_v13, %v329_v52  ;;  %v584_v40 = vshll.u32 %v1984_v46, %v1585_v42 }
  0xbd   : > { %v312_v59 = vadd.s32 %v310_v57, %v304_v38  ;;  %vm313_vm15 = vc.u32 %v311_v55, %v307_v53  ;;  %v336_v63 = vsel %vm335_vm14, 1, %v1328_v14  ;;  %v585_v38 = vshrl.u32 %v1329_v31, %v1596_v22 }
  0xbe   : > { %v314_v18 = vsel %vm313_vm15, 1, %v1328_v14  ;;  %v338_v20 = vadd.s32 %v336_v63, %v334_v24  ;;  %v330_v44 = vshrl.u32 %v325_v26, 16  ;;  %v587_v34 = vshll.u32 %v1329_v31, %v1585_v42 }
  0xbf   : > { %v316_v30 = vadd.s32 %v314_v18, %v312_v59  ;;  %v588_v53 = vshrl.u32 %v1986_v33, %v1596_v22  ;;  %v308_v54 = vshrl.u32 %v303_v29, 16  ;;  %v583_v56 = vor.u32 %v582_v12, %v581_v27 }
  0xc0   : > { %v339_v48 = vadd.s32 %v338_v20, %v328_v50  ;;  %v586_v45 = vor.u32 %v585_v38, %v584_v40  ;;  %v407_v57 = vshrl.u32 %v406_v0, 23  ;;  %v1628_v63 = vadd.s32 %v333_v13, %v329_v52 }
  0xc1   : > { %v317_v55 = vadd.s32 %v316_v30, %v306_v49  ;;  %v589_v58 = vor.u32 %v588_v53, %v587_v34  ;;  %vm593_vm1 = vcmp.lt.s32.totalorder %v1592_v17, 4  ;;  %v598_v42 = vsel %vm590_vm0, %v577_v16, %v580_v25 }
  0xc2   : > { %v340_v24 = vadd.s32 %v339_v48, %v330_v44  ;;  %v341_v26 = vmul.u32 %v1562_v6, %v1599_v23  ;;  %vm592_vm2 = vcmp.lt.s32.totalorder %v1592_v17, 3  ;;  %v599_v0 = vsel %vm593_vm1, %v586_v45, 920167782 }
  0xc3   : > { %v1626_v59 = vadd.s32 %v317_v55, %v308_v54  ;;  %vm591_vm4 = vcmp.lt.s32.totalorder %v1592_v17, 2  ;;  %v600_v49 = vsel %vm592_vm2, %v583_v56, %v599_v0  ;;  %v602_v50 = vsel %vm590_vm0, %v580_v25, %v583_v56 }
  0xc4   : > { %v344_v29 = vadd.s32 1, %v340_v24  ;;  %v1106_v52 = vadd.s32 4294967169, %v407_v57  ;;  %v601_v6 = vsel %vm591_vm4, %v598_v42, %v600_v49  ;;  %v603_v23 = vsel %vm593_vm1, %v589_v58, 1326507024 }
  0xc5   : > { %vm343_vm3 = vc.u32 %v1626_v59, %v1628_v63  ;;  %v604_v20 = vsel %vm592_vm2, %v586_v45, %v603_v23  ;;  %v631_v27 = vand.u32 65535, %v601_v6  ;;  %v632_v30 = vshrl.u32 %v601_v6, 16 }
  0xc6   : > { %v345_v13 = vsel %vm343_vm3, %v344_v29, %v340_v24  ;;  %v605_v12 = vsel %vm591_vm4, %v602_v50, %v604_v20  ;;  %v607_v40 = vand.u32 65535, %v1580_v36  ;;  %v608_v38 = vshrl.u32 %v1580_v36, 16 }
  0xc7   : > { %v346_v18 = vadd.s32 %v345_v13, %v341_v26  ;;  %v770_v44 = vshll.u32 %v1565_v7, 16  ;;  %v609_v34 = vand.u32 65535, %v605_v12  ;;  %v610_v53 = vshrl.u32 %v605_v12, 16 }
  0xc8   : > { %v771_v54 = vshrl.u32 %v1565_v7, 16  ;;  %v574_v55 = vshrl.u32 %v1331_v37, %v1596_v22  ;;  %v595_v45 = vsel %vm593_vm1, %v583_v56, 2102212464  ;;  %v634_v57 = vmul.u32 %v632_v30, %v607_v40 }
  0xc9   : > { %v347_v48 = vadd.s32 536870912, %v346_v18  ;;  %v772_v24 = vshll.u32 %v1568_v11, 16  ;;  %v1662_v58 = vadd.s32 1, %v1106_v52  ;;  %v612_v26 = vmul.u32 %v610_v53, %v607_v40 }
  0xca   : > { %v635_v29 = vmul.u32 %v631_v27, %v608_v38  ;;  %v594_v0 = vsel %vm590_vm0, %v574_v55, %v577_v16  ;;  %v613_v49 = vmul.u32 %v609_v34, %v608_v38  ;;  %v633_v50 = vmul.u32 %v631_v27, %v607_v40 }
  0xcb   : > { %v1664_v42 = vshrl.u32 %v347_v48, 30  ;;  %v637_v13 = vshll.u32 %v634_v57, 16  ;;  %v596_v56 = vsel %vm592_vm2, %v580_v25, %v595_v45  ;;  %v611_v6 = vmul.u32 %v609_v34, %v607_v40 }
  0xcc   : > { %v615_v23 = vshll.u32 %v612_v26, 16  ;;  %v614_v20 = vmul.u32 %v610_v53, %v608_v38  ;;  %v636_v52 = vmul.u32 %v632_v30, %v608_v38  ;;  %vm1672_vm7 = vc.u32 %v1560_v62, %v770_v44 }
  0xcd   : > { %v349_v22 = vshll.u32 %v1664_v42, 30  ;;  %vm641_vm6 = vc.u32 %v633_v50, %v637_v13  ;;  %v639_v27 = vshll.u32 %v635_v29, 16  ;;  %v617_v55 = vshll.u32 %v613_v49, 16 }
  0xce   : > { %vm619_vm8 = vc.u32 %v611_v6, %v615_v23  ;;  %v621_v16 = vadd.s32 %v615_v23, %v611_v6  ;;  %v642_v46 = vsel %vm641_vm6, 1, %v1328_v14  ;;  %v643_v25 = vadd.s32 %v637_v13, %v633_v50 }
  0xcf   : > { %v350_v48 = vsub.s32 %v346_v18, %v349_v22  ;;  %v620_v28 = vsel %vm619_vm8, 1, %v1328_v14  ;;  %v776_v30 = vadd.s32 %v770_v44, %v1560_v62  ;;  %v644_v38 = vadd.s32 %v642_v46, %v636_v52 }
  0xd0   : > { %v622_v34 = vadd.s32 %v620_v28, %v614_v20  ;;  %vm623_vm10 = vc.u32 %v621_v16, %v617_v55  ;;  %vm645_vm11 = vc.u32 %v643_v25, %v639_v27  ;;  %v775_v18 = vsel %vm1672_vm7, 1, %v1328_v14 }
  0xd1   : > { %vm351_vm9 = vcmp.lt.s32.totalorder %v350_v48, 0  ;;  %v352_v40 = vsub.s32 0, %v350_v48  ;;  %v624_v45 = vsel %vm623_vm10, 1, %v1328_v14  ;;  %v638_v22 = vshrl.u32 %v634_v57, 16 }
  0xd2   : > { %v646_v6 = vsel %vm645_vm11, 1, %v1328_v14  ;;  %v616_v50 = vshrl.u32 %v612_v26, 16  ;;  %v626_v13 = vadd.s32 %v624_v45, %v622_v34  ;;  %vm250_vm12 = vcmp.lt.s32.totalorder %v1499_v4, 0 }
  0xd3   : > { %v353_v53 = vsel %vm351_vm9, %v352_v40, %v350_v48  ;;  %v648_v33 = vadd.s32 %v646_v6, %v644_v38  ;;  %v597_v28 = vsel %vm591_vm4, %v594_v0, %v596_v56  ;;  %v618_v46 = vshrl.u32 %v613_v49, 16 }
  0xd4   : > { %v354_v23 = vclz %v353_v53  ;;  %v640_v62 = vshrl.u32 %v635_v29, 16  ;;  %vm778_vm13 = vc.u32 %v776_v30, %v772_v24  ;;  %v627_v20 = vadd.s32 %v626_v13, %v616_v50 }
  0xd5   : > { %v649_v52 = vadd.s32 %v648_v33, %v638_v22  ;;  %v777_v12 = vadd.s32 %v775_v18, %v1583_v41  ;;  %vm414_vm14 = vcmp.gt.s32.totalorder %v1662_v58, 0  ;;  %v779_v57 = vsel %vm778_vm13, 1, %v1328_v14 }
  0xd6   : > { %v1104_v44 = vadd.s32 4294967294, %v354_v23  ;;  %v786_v26 = vand.u32 65535, %v1557_v61  ;;  %v787_v16 = vshrl.u32 %v1557_v61, 16  ;;  %v342_v17 = vadd.s32 %v1628_v63, %v1626_v59 }
  0xd7   : > { %v1694_v0 = vadd.s32 %v627_v20, %v618_v46  ;;  %v650_v24 = vadd.s32 %v649_v52, %v640_v62  ;;  %v1696_v49 = vadd.s32 %v643_v25, %v639_v27  ;;  %v651_v33 = vmul.u32 %v1580_v36, %v597_v28 }
  0xd8   : > { %vm1105_vm15 = vcmp.lt.s32.totalorder %v1104_v44, 0  ;;  %v789_v41 = vmul.u32 %v787_v16, %v1530_v47  ;;  %v372_v40 = vsub.s32 4, %v1664_v42  ;;  %v781_v34 = vadd.s32 %v779_v57, %v777_v12 }
  0xd9   : > { %v357_v29 = vsel %vm1105_vm15, 0, %v1104_v44  ;;  %vm653_vm0 = vc.u32 %v1694_v0, %v1696_v49  ;;  %v654_v61 = vadd.s32 1, %v650_v24  ;;  %v788_v59 = vmul.u32 %v786_v26, %v1530_v47 }
  0xda   : > { %v358_v56 = vsub.s32 32, %v357_v29  ;;  %v362_v55 = vsub.s32 4294967266, %v357_v29  ;;  %v790_v63 = vmul.u32 %v786_v26, %v1535_v51  ;;  %v359_v30 = vshll.u32 %v350_v48, %v357_v29 }
  0xdb   : > { %v792_v38 = vshll.u32 %v789_v41, 16  ;;  %vm1707_vm1 = vcmp.le.f32.partialorder %v248_v19, 0.7853982  ;;  %v655_v18 = vsel %vm653_vm0, %v654_v61, %v650_v24  ;;  %v791_v53 = vmul.u32 %v787_v16, %v1535_v51 }
  0xdc   : > { %v360_v27 = vshrl.u32 %v342_v17, %v358_v56  ;;  %v363_v25 = vadd.s32 127, %v362_v55  ;;  %v794_v45 = vshll.u32 %v790_v63, 16  ;;  %v373_v47 = vsel %vm250_vm12, %v372_v40, %v1664_v42 }
  0xdd   : > { %v656_v48 = vadd.s32 %v655_v18, %v651_v33  ;;  %v415_v23 = vsel %vm414_vm14, %v1662_v58, 0  ;;  %v773_v19 = vshrl.u32 %v1568_v11, 16  ;;  %vm796_vm2 = vc.u32 %v788_v59, %v792_v38 }
  0xde   : > { %v361_v22 = vor.u32 %v360_v27, %v359_v30  ;;  %v364_v6 = vshll.u32 %v363_v25, 23  ;;  %v798_v50 = vadd.s32 %v792_v38, %v788_v59  ;;  %v782_v51 = vadd.s32 %v781_v34, %v771_v54 }
  0xdf   : > { %v657_v28 = vadd.s32 536870912, %v656_v48  ;;  %v797_v46 = vsel %vm796_vm2, 1, %v1328_v14  ;;  %v375_v62 = vsel %vm1707_vm1, 0, %v373_v47  ;;  %v793_v42 = vshrl.u32 %v789_v41, 16 }
  0xe0   : > { %v365_v13 = vor.u32 4788187, %v364_v6  ;;  %v799_v44 = vadd.s32 %v797_v46, %v791_v53  ;;  %vm800_vm3 = vc.u32 %v798_v50, %v794_v45  ;;  %v368_v52 = vcvt.s32.f32 %v361_v22 }
  0xe1   : > { %v658_v58 = vshrl.u32 %v657_v28, 30  ;;  %v801_v11 = vsel %vm800_vm3, 1, %v1328_v14  ;;  %v1725_v12 = vand.u32 31, %v415_v23  ;;  %v795_v57 = vshrl.u32 %v790_v63, 16 }
  0xe2   : > { %v366_v20 = vand.u32 2147483647, %v365_v13  ;;  %v803_v26 = vadd.s32 %v801_v11, %v799_v44  ;;  %v783_v54 = vadd.s32 %v782_v51, %v773_v19  ;;  %v802_v17 = vadd.s32 %v798_v50, %v794_v45 }
  0xe3   : > { %v659_v7 = vshll.u32 %v658_v58, 30  ;;  %v392_v24 = vadd.s32 3, %v375_v62  ;;  %v752_v29 = vsel %vm746_vm5, %v1548_v10, %v1553_v60  ;;  %v403_v41 = vand.u32 2147483647, %v1538_v9 }
  0xe4   : > { %v369_v16 = vmul.f32 %v368_v52, %v366_v20  ;;  %v804_v33 = vadd.s32 %v803_v26, %v793_v42  ;;  %vm1734_vm4 = vcmp.le.f32.partialorder %v558_v32, 0.7853982  ;;  %vm560_vm6 = vcmp.lt.s32.totalorder %v1496_v1, 0 }
  0xe5   : > { %v1739_v40 = vsub.s32 %v656_v48, %v659_v7  ;;  %v1741_v34 = vshrl.u32 %v415_v23, 5  ;;  %v418_v61 = vsub.s32 32, %v1725_v12  ;;  %v682_v35 = vsub.s32 4, %v658_v58 }
  0xe6   : > { %v370_v56 = vxor.u32 2147483648, %v369_v16  ;;  %v805_v10 = vadd.s32 %v804_v33, %v795_v57  ;;  %vm808_vm7 = vc.u32 %v783_v54, %v802_v17  ;;  %v1753_v63 = vand.u32 3, %v392_v24 }
  0xe7   : > { %vm661_vm5 = vcmp.lt.s32.totalorder %v1739_v40, 0  ;;  %v662_v32 = vsub.s32 0, %v1739_v40  ;;  %v1757_v27 = vand.u32 8388607, %v403_v41  ;;  %v652_v38 = vadd.s32 %v1696_v49, %v1694_v0 }
  0xe8   : > { %v371_v60 = vsel %vm250_vm12, %v370_v56, %v369_v16  ;;  %v809_v30 = vadd.s32 1, %v805_v10  ;;  %v806_v53 = vmul.u32 %v1509_v21, %v752_v29  ;;  %v683_v45 = vsel %vm560_vm6, %v682_v35, %v658_v58 }
  0xe9   : > { %v1751_v59 = vsel %vm1707_vm1, %v1499_v4, %v371_v60  ;;  %v663_v18 = vsel %vm661_vm5, %v662_v32, %v1739_v40  ;;  %v421_v6 = vshrl.u32 %v1332_v39, %v418_v61  ;;  %v1768_v23 = vadd.s32 %v802_v17, %v783_v54 }
  0xea   : > { %v376_v25 = vmul.f32 %v1751_v59, %v1751_v59  ;;  %v664_v36 = vclz %v663_v18  ;;  %v810_v22 = vsel %vm808_vm7, %v809_v30, %v805_v10  ;;  %v1771_v19 = vshrl.u32 %v1331_v37, %v418_v61 }
  0xeb   : > { %v811_v0 = vadd.s32 %v810_v22, %v806_v53  ;;  %v411_v49 = vor.u32 8388608, %v1757_v27  ;;  %v420_v21 = vshll.u32 %v1331_v37, %v1725_v12  ;;  %v685_v51 = vsel %vm1734_vm4, 0, %v683_v45 }
  0xec   : > { %v377_v47 = vmul.f32 -0.001358992, %v376_v25  ;;  %v384_v48 = vmul.f32 -0.00019511016, %v376_v25  ;;  %v1110_v50 = vadd.s32 4294967294, %v664_v36  ;;  %v423_v46 = vshll.u32 %v1332_v39, %v1725_v12 }
  0xed   : > { %v812_v62 = vadd.s32 536870912, %v811_v0  ;;  %v1780_v42 = vor.u32 %v421_v6, %v420_v21  ;;  %v424_v44 = vshrl.u32 %v1333_v43, %v418_v61  ;;  %v426_v37 = vshll.u32 %v1333_v43, %v1725_v12 }
  0xee   : > { %v378_v13 = vadd.f32 0.041655596, %v377_v47  ;;  %v385_v28 = vadd.f32 0.008332121, %v384_v48  ;;  %vm1111_vm8 = vcmp.lt.s32.totalorder %v1110_v50, 0  ;;  %v702_v26 = vadd.s32 3, %v685_v51 }
  0xef   : > { %v667_v58 = vsel %vm1111_vm8, 0, %v1110_v50  ;;  %v1785_v16 = vshrl.u32 %v812_v62, 30  ;;  %v430_v39 = vshrl.u32 %v1329_v31, %v418_v61  ;;  %v1995_v17 = vmov 1326507024  }
  0xf0   : > { %v379_v20 = vmul.f32 %v378_v13, %v376_v25  ;;  %v386_v52 = vmul.f32 %v385_v28, %v376_v25  ;;  %v668_v11 = vsub.s32 32, %v667_v58  ;;  %v672_v57 = vsub.s32 4294967266, %v667_v58 }
  0xf1   : > { %v433_v24 = vshrl.u32 %v1995_v17, %v418_v61  ;;  %vm395_vm9 = vcmp.eq.s32.totalorder %v1753_v63, 0  ;;  %vm398_vm10 = vcmp.eq.s32.totalorder %v1753_v63, 2  ;;  %v669_v29 = vshll.u32 %v1739_v40, %v667_v58 }
  0xf2   : > { %v380_v7 = vadd.f32 -0.4999988, %v379_v20  ;;  %v387_v54 = vadd.f32 -0.16666654, %v386_v52  ;;  %v670_v33 = vshrl.u32 %v652_v38, %v668_v11  ;;  %v673_v56 = vadd.s32 127, %v672_v57 }
  0xf3   : > { %v814_v43 = vshll.u32 %v1785_v16, 30  ;;  %vm394_vm11 = vcmp.lt.s32.totalorder %v1753_v63, 2  ;;  %vm884_vm12 = vcmask 523264   ;;  %v1996_v60 = vmov 2102212464  }
  0xf4   : > { %v381_v35 = vmul.f32 %v380_v7, %v376_v25  ;;  %v388_v10 = vmul.f32 %v387_v54, %v376_v25  ;;  %v427_v32 = vshrl.u32 %v1996_v60, %v418_v61  ;;  %v429_v30 = vshll.u32 %v1996_v60, %v1725_v12  ;;  %v1224_v60 = vld [vmem:[%s1420_s8 + $0x18] sm:$0xff]  ;;  %s1275_s8 = scalar_lea.hbm %s1982_s3, 64 }
  0xf5   : > { %vm391_vm13 = vweird.f32 %v1499_v4  ;;  %v671_v18 = vor.u32 %v670_v33, %v669_v29  ;;  %v674_v53 = vshll.u32 %v673_v56, 23  ;;  %v1798_v36 = vsub.s32 %v811_v0, %v814_v43  ;;  %p1277_p4 = scmp.lt.s32.totalorder %s1275_s8, %s1271_s5 }
  0xf6   : > { %v432_v40 = vshll.u32 %v1329_v31, %v1725_v12  ;;  %v382_v38 = vadd.f32 1.0, %v381_v35  ;;  %v389_v45 = vadd.f32 1.0, %v388_v10  ;;  %v431_v25 = vor.u32 %v430_v39, %v429_v30 }
  0xf7   : > { %v675_v22 = vor.u32 4788187, %v674_v53  ;;  %v1335_v6 = vmov 2   ;;  %vm816_vm14 = vcmp.lt.s32.totalorder %v1798_v36, 0  ;;  %v817_v61 = vsub.s32 0, %v1798_v36  ;;  %p1278_p7 = por %p1277_p4, %p1276_p3 }
  0xf8   : > { %1220 = vset.pattern.permute.xlu0 %v1335_v6  ;;  %1221 = vset.pattern.permute.xlu1 %v1335_v6  ;;  %v434_v47 = vor.u32 %v433_v24, %v432_v40  ;;  %v390_v48 = vmul.f32 %v389_v45, %v1751_v59  ;;  %v399_v50 = vxor.u32 2147483648, %v382_v38  ;;  %v1807_v31 = vor.u32 %v424_v44, %v423_v46 }
  0xf9   : > { %977 = vperm.xlu0 %1220, %v1434_v5   ;;  %981 = vperm.xlu1 %1221, %v1424_v2   ;;  %v428_v12 = vor.u32 %v427_v32, %v426_v37  ;;  %v676_v0 = vand.u32 2147483647, %v675_v22  ;;  %v678_v21 = vcvt.s32.f32 %v671_v18  ;;  %v1809_v13 = vand.u32 3, %v702_v26  ;;  %p1279_p8 = pnand %p1278_p7, %p1274_p2 }
  0xfa   : > { %v818_v28 = vsel %vm816_vm14, %v817_v61, %v1798_v36  ;;  %1219 = vset.pattern.permute.xlu2 %v1335_v6  ;;  %v396_v51 = vxor.u32 2147483648, %v390_v48  ;;  %vm435_vm15 = vcmp.lt.s32.totalorder %v1741_v34, 1  ;;  %vm438_vm0 = vcmp.lt.s32.totalorder %v1741_v34, 4 }
  0xfb   : > { %v819_v62 = vclz %v818_v28  ;;  %973 = vperm.xlu2 %1219, %v1427_v3   ;;  %v679_v5 = vmul.f32 %v678_v21, %v676_v0  ;;  %vm437_vm1 = vcmp.lt.s32.totalorder %v1741_v34, 3  ;;  %v444_v2 = vsel %vm438_vm0, %v431_v25, 920167782 }
  0xfc   : > { %v448_v59 = vsel %vm438_vm0, %v434_v47, 1326507024  ;;  %v397_v46 = vsel %vm395_vm9, %v382_v38, %v396_v51  ;;  %v400_v44 = vsel %vm398_vm10, %v399_v50, %v390_v48  ;;  %v447_v3 = vsel %vm435_vm15, %v1807_v31, %v428_v12 }
  0xfd   : > { %v1113_v20 = vadd.s32 4294967294, %v819_v62  ;;  %v401_v52 = vsel %vm394_vm11, %v397_v46, %v400_v44  ;;  %v680_v58 = vxor.u32 2147483648, %v679_v5  ;;  %v443_v37 = vsel %vm435_vm15, %v1780_v42, %v1807_v31 }
  0xfe   : > { %v445_v11 = vsel %vm437_vm1, %v428_v12, %v444_v2  ;;  %v402_v57 = vsel %vm391_vm13, nan, %v401_v52  ;;  %vm436_vm3 = vcmp.lt.s32.totalorder %v1741_v34, 2  ;;  %v449_v26 = vsel %vm437_vm1, %v431_v25, %v448_v59 }
  0xff   : > { %vm1114_vm2 = vcmp.lt.s32.totalorder %v1113_v20, 0  ;;  %1115 = vmatmul.msk.f32.vlgmr.msra.gmra.mxu0 %vm884_vm12, %v402_v57  ;;  %v681_v63 = vsel %vm560_vm6, %v680_v58, %v679_v5  ;;  %1119 = vmatmul.msk.f32.vlgmr.msra.gmra.mxu1 %vm884_vm12, %v402_v57  ;;  %v450_v54 = vsel %vm436_vm3, %v447_v3, %v449_v26  ;;  %v1848_v4 = vshll.u32 %v411_v49, 8 }
 0x100   : > { %v822_v7 = vsel %vm1114_vm2, 0, %v1113_v20  ;;  %v1853_v39 = vsel %vm1734_vm4, %v1496_v1, %v681_v63  ;;  %v446_v29 = vsel %vm436_vm3, %v443_v37, %v445_v11  ;;  %v454_v27 = vand.u32 65535, %v450_v54 }
 0x101   : > { %v823_v17 = vsub.s32 32, %v822_v7  ;;  %v827_v24 = vsub.s32 4294967266, %v822_v7  ;;  %v686_v33 = vmul.f32 %v1853_v39, %v1853_v39  ;;  %v824_v56 = vshll.u32 %v1798_v36, %v822_v7 }
 0x102   : > { %v453_v43 = vshrl.u32 %v1848_v4, 16  ;;  %v452_v55 = vand.u32 65535, %v1848_v4  ;;  %v455_v10 = vshrl.u32 %v450_v54, 16  ;;  %v837_v18 = vsub.s32 4, %v1785_v16 }
 0x103   : > { %v825_v49 = vshrl.u32 %v1768_v23, %v823_v17  ;;  %v828_v35 = vadd.s32 127, %v827_v24  ;;  %985 = vperm.xlu2 %1219, %v1224_v60   ;;  %v687_v32 = vmul.f32 -0.001358992, %v686_v33  ;;  %v694_v30 = vmul.f32 -0.00019511016, %v686_v33 }
 0x104   : > { %v1865_v53 = vmul.u32 %v454_v27, %v453_v43  ;;  %v457_v36 = vmul.u32 %v455_v10, %v452_v55  ;;  %v476_v45 = vand.u32 65535, %v446_v29  ;;  %vm715_vm4 = vcmp.lt.s32.totalorder %v1457_v15, 0 }
 0x105   : > { %v826_v40 = vor.u32 %v825_v49, %v824_v56  ;;  %v829_v38 = vshll.u32 %v828_v35, 23  ;;  %v688_v25 = vadd.f32 0.041655596, %v687_v32  ;;  %v695_v22 = vadd.f32 0.008332121, %v694_v30 }
 0x106   : > { %v440_v23 = vsel %vm438_vm0, %v428_v12, 2102212464  ;;  %v456_v6 = vmul.u32 %v454_v27, %v452_v55  ;;  %v1997_v61 = vand.u32 2147483647, %v1457_v15  ;;  %v459_v50 = vmul.u32 %v455_v10, %v453_v43 }
 0x107   : > { %v830_v48 = vor.u32 4788187, %v829_v38  ;;  %v460_v0 = vshll.u32 %v457_v36, 16  ;;  %v462_v21 = vshll.u32 %v1865_v53, 16  ;;  %v689_v28 = vmul.f32 %v688_v25, %v686_v33 }
 0x108   : > { %vm1872_vm6 = vcmp.le.f32.partialorder %v1997_v61, 0.7853982  ;;  %v696_v51 = vmul.f32 %v695_v22, %v686_v33  ;;  %v833_v62 = vcvt.s32.f32 %v826_v40  ;;  %v477_v5 = vshrl.u32 %v446_v29, 16 }
 0x109   : > { %v831_v2 = vand.u32 2147483647, %v830_v48  ;;  %vm464_vm5 = vc.u32 %v456_v6, %v460_v0  ;;  %v466_v59 = vadd.s32 %v460_v0, %v456_v6  ;;  %v480_v12 = vmul.u32 %v476_v45, %v453_v43 }
 0x10a   : > { %v690_v46 = vadd.f32 -0.4999988, %v689_v28  ;;  %v697_v44 = vadd.f32 -0.16666654, %v696_v51  ;;  %v465_v20 = vsel %vm464_vm5, 1, %v1328_v14  ;;  %v479_v3 = vmul.u32 %v477_v5, %v452_v55 }
 0x10b   : > { %vm705_vm7 = vcmp.eq.s32.totalorder %v1809_v13, 0  ;;  %vm708_vm8 = vcmp.eq.s32.totalorder %v1809_v13, 2  ;;  %v834_v52 = vmul.f32 %v833_v62, %v831_v2  ;;  %v467_v58 = vadd.s32 %v465_v20, %v459_v50 }
 0x10c   : > { %vm468_vm9 = vc.u32 %v466_v59, %v462_v21  ;;  %v478_v37 = vmul.u32 %v476_v45, %v452_v55  ;;  %v691_v11 = vmul.f32 %v690_v46, %v686_v33  ;;  %v698_v57 = vmul.f32 %v697_v44, %v686_v33 }
 0x10d   : > { %vm704_vm10 = vcmp.lt.s32.totalorder %v1809_v13, 2  ;;  %v469_v26 = vsel %vm468_vm9, 1, %v1328_v14  ;;  %v482_v63 = vshll.u32 %v479_v3, 16  ;;  %vm701_vm11 = vweird.f32 %v1496_v1 }
 0x10e   : > { %v835_v7 = vxor.u32 2147483648, %v834_v52  ;;  %v461_v54 = vshrl.u32 %v457_v36, 16  ;;  %v471_v17 = vadd.s32 %v469_v26, %v467_v58  ;;  %v481_v24 = vmul.u32 %v477_v5, %v453_v43 }
 0x10f   : > { %v692_v29 = vadd.f32 1.0, %v691_v11  ;;  %v699_v56 = vadd.f32 1.0, %v698_v57  ;;  %v484_v27 = vshll.u32 %v480_v12, 16  ;;  %vm486_vm13 = vc.u32 %v478_v37, %v482_v63 }
 0x110   : > { %v836_v49 = vsel %vm715_vm4, %v835_v7, %v834_v52  ;;  %v472_v35 = vadd.s32 %v471_v17, %v461_v54  ;;  %v487_v33 = vsel %vm486_vm13, 1, %v1328_v14  ;;  %v488_v55 = vadd.s32 %v482_v63, %v478_v37 }
 0x111   : > { %v700_v10 = vmul.f32 %v699_v56, %v1853_v39  ;;  %v709_v60 = vxor.u32 2147483648, %v692_v29  ;;  %v839_v32 = vsel %vm1872_vm6, %v1457_v15, %v836_v49  ;;  %v489_v30 = vadd.s32 %v487_v33, %v481_v24 }
 0x112   : > { %v838_v43 = vsel %vm715_vm4, %v837_v18, %v1785_v16  ;;  %v841_v40 = vmul.f32 %v839_v32, %v839_v32  ;;  %v439_v38 = vsel %vm435_vm15, %v1771_v19, %v1780_v42  ;;  %vm490_vm14 = vc.u32 %v488_v55, %v484_v27 }
 0x113   : > { %v706_v36 = vxor.u32 2147483648, %v700_v10  ;;  %v441_v39 = vsel %vm437_vm1, %v1807_v31, %v440_v23  ;;  %v463_v45 = vshrl.u32 %v1865_v53, 16  ;;  %v491_v25 = vsel %vm490_vm14, 1, %v1328_v14 }
 0x114   : > { %v842_v22 = vmul.f32 -0.001358992, %v841_v40  ;;  %v849_v6 = vmul.f32 -0.00019511016, %v841_v40  ;;  %v483_v61 = vshrl.u32 %v479_v3, 16  ;;  %v493_v16 = vadd.s32 %v491_v25, %v489_v30 }
 0x115   : > { %v707_v18 = vsel %vm705_vm7, %v692_v29, %v706_v36  ;;  %v710_v19 = vsel %vm708_vm8, %v709_v60, %v700_v10  ;;  %v473_v42 = vadd.s32 %v472_v35, %v463_v45  ;;  %v485_v48 = vshrl.u32 %v480_v12, 16 }
 0x116   : > { %v711_v50 = vsel %vm704_vm10, %v707_v18, %v710_v19  ;;  %v843_v31 = vadd.f32 0.041655596, %v842_v22  ;;  %v850_v23 = vadd.f32 0.008332121, %v849_v6  ;;  %v494_v53 = vadd.s32 %v493_v16, %v483_v61 }
 0x117   : > { %v712_v14 = vsel %vm701_vm11, nan, %v711_v50  ;;  %v442_v0 = vsel %vm436_vm3, %v439_v38, %v441_v39  ;;  %v492_v21 = vadd.s32 %v488_v55, %v484_v27  ;;  %v840_v28 = vsel %vm1872_vm6, 0, %v838_v43 }
 0x118   : > { %1117 = vmatmul.msk.f32.vlgmr.msra.gmra.mxu2 %vm884_vm12, %v712_v14  ;;  %1121 = vmatmul.msk.f32.vlgmr.msra.gmra.mxu3 %vm884_vm12, %v712_v14  ;;  %v844_v51 = vmul.f32 %v843_v31, %v841_v40  ;;  %v851_v13 = vmul.f32 %v850_v23, %v841_v40  ;;  %v495_v62 = vadd.s32 %v494_v53, %v485_v48  ;;  %v857_v1 = vadd.s32 3, %v840_v28 }
 0x119   : > { %vm498_vm15 = vc.u32 %v473_v42, %v492_v21  ;;  %v496_v12 = vmul.u32 %v1848_v4, %v442_v0  ;;  %vm856_vm3 = vweird.f32 %v1457_v15  ;;  %v497_v33 = vadd.s32 %v492_v21, %v473_v42 }
 0x11a   : > { %v845_v5 = vadd.f32 -0.4999988, %v844_v51  ;;  %v852_v2 = vadd.f32 -0.16666654, %v851_v13  ;;  %v499_v59 = vadd.s32 1, %v495_v62  ;;  %v858_v58 = vand.u32 3, %v857_v1 }
 0x11b   : > { %vm405_vm5 = vcmp.lt.s32.totalorder %v1538_v9, 0  ;;  %vm404_vm7 = vcmp.le.f32.partialorder %v403_v41, 0.7853982  ;;  %vm546_vm11 = vweird.f32 %v1538_v9  ;;  %vm955_vm13 = vcmp.lt.s32.totalorder %v1438_v8, 64 }
 0x11c   : > { %v846_v34 = vmul.f32 %v845_v5, %v841_v40  ;;  %v853_v46 = vmul.f32 %v852_v2, %v841_v40  ;;  %v500_v44 = vsel %vm498_vm15, %v499_v59, %v495_v62  ;;  %vm860_vm0 = vcmp.eq.s32.totalorder %v858_v58, 0 }
 0x11d   : > { %v501_v20 = vadd.s32 %v500_v44, %v496_v12  ;;  %vm863_vm1 = vcmp.eq.s32.totalorder %v858_v58, 2  ;;  %vm859_vm2 = vcmp.lt.s32.totalorder %v858_v58, 2 }
 0x11e   : > { %v847_v3 = vadd.f32 1.0, %v846_v34  ;;  %v854_v52 = vadd.f32 1.0, %v853_v46  ;;  %v966_v46 = vpop.permute.xlu2 %965 }
 0x11f   : > { %v502_v37 = vadd.s32 536870912, %v501_v20 }
 0x120   : > { %v855_v47 = vmul.f32 %v854_v52, %v839_v32  ;;  %v864_v11 = vxor.u32 2147483648, %v847_v3 }
 0x121   : > { %v503_v57 = vshrl.u32 %v502_v37, 30 }
 0x122   : > { %v861_v26 = vxor.u32 2147483648, %v855_v47  ;;  %v865_v54 = vsel %vm863_vm1, %v864_v11, %v855_v47  ;;  %v962_v47 = vpop.permute.xlu1 %961 }
 0x123   : > { %v504_v63 = vshll.u32 %v503_v57, 30  ;;  %v527_v22 = vsub.s32 4, %v503_v57 }
 0x124   : > { %v862_v7 = vsel %vm860_vm0, %v847_v3, %v861_v26 }
 0x125   : > { %v866_v4 = vsel %vm859_vm2, %v862_v7, %v865_v54  ;;  %v505_v17 = vsub.s32 %v501_v20, %v504_v63  ;;  %v528_v19 = vsel %vm405_vm5, %v527_v22, %v503_v57  ;;  %v958_v20 = vpop.permute.xlu0 %957 }
 0x126   : > { %v867_v24 = vsel %vm856_vm3, nan, %v866_v4  ;;  %v530_v50 = vsel %vm404_vm7, 0, %v528_v19 }
 0x127   : > { %1118 = vmatmul.msk.f32.gmra.mxu2 %vm884_vm12, %v867_v24  ;;  %1122 = vmatmul.msk.f32.gmra.mxu3 %vm884_vm12, %v867_v24  ;;  %vm506_vm4 = vcmp.lt.s32.totalorder %v505_v17, 0  ;;  %v507_v29 = vsub.s32 0, %v505_v17  ;;  %v547_v0 = vadd.s32 3, %v530_v50 }
 0x129   : > { %v508_v56 = vsel %vm506_vm4, %v507_v29, %v505_v17  ;;  %v548_v13 = vand.u32 3, %v547_v0 }
 0x12a   : > { %v509_v27 = vclz %v508_v56  ;;  %v970_v11 = vpop.permute.xlu1 %969 }
 0x12b   : > { %vm550_vm8 = vcmp.eq.s32.totalorder %v548_v13, 0  ;;  %vm553_vm9 = vcmp.eq.s32.totalorder %v548_v13, 2  ;;  %vm549_vm10 = vcmp.lt.s32.totalorder %v548_v13, 2 }
 0x12c   : > { %v1107_v49 = vadd.s32 4294967294, %v509_v27 }
 0x12e   : > { %vm1108_vm6 = vcmp.lt.s32.totalorder %v1107_v49, 0 }
 0x12f   : > { %v512_v35 = vsel %vm1108_vm6, 0, %v1107_v49 }
 0x130   : > { %v513_v55 = vsub.s32 32, %v512_v35  ;;  %v517_v10 = vsub.s32 4294967266, %v512_v35  ;;  %v514_v60 = vshll.u32 %v505_v17, %v512_v35 }
 0x132   : > { %v515_v32 = vshrl.u32 %v497_v33, %v513_v55  ;;  %v518_v15 = vadd.s32 127, %v517_v10 }
 0x134   : > { %v516_v30 = vor.u32 %v515_v32, %v514_v60  ;;  %v519_v43 = vshll.u32 %v518_v15, 23 }
 0x136   : > { %v520_v40 = vor.u32 4788187, %v519_v43  ;;  %v523_v36 = vcvt.s32.f32 %v516_v30 }
 0x138   : > { %v521_v38 = vand.u32 2147483647, %v520_v40 }
 0x13a   : > { %v524_v39 = vmul.f32 %v523_v36, %v521_v38 }
 0x13c   : > { %v525_v45 = vxor.u32 2147483648, %v524_v39 }
 0x13e   : > { %v526_v25 = vsel %vm405_vm5, %v525_v45, %v524_v39 }
 0x13f   : > { %v529_v6 = vsel %vm404_vm7, %v1538_v9, %v526_v25 }
 0x140   : > { %v531_v61 = vmul.f32 %v529_v6, %v529_v6 }
 0x142   : > { %v532_v16 = vmul.f32 -0.001358992, %v531_v61  ;;  %v539_v18 = vmul.f32 -0.00019511016, %v531_v61 }
 0x144   : > { %v533_v42 = vadd.f32 0.041655596, %v532_v16  ;;  %v540_v48 = vadd.f32 0.008332121, %v539_v18 }
 0x146   : > { %v534_v31 = vmul.f32 %v533_v42, %v531_v61  ;;  %v541_v23 = vmul.f32 %v540_v48, %v531_v61 }
 0x148   : > { %v535_v53 = vadd.f32 -0.4999988, %v534_v31  ;;  %v542_v14 = vadd.f32 -0.16666654, %v541_v23 }
 0x14a   : > { %v536_v21 = vmul.f32 %v535_v53, %v531_v61  ;;  %v543_v28 = vmul.f32 %v542_v14, %v531_v61 }
 0x14c   : > { %v537_v51 = vadd.f32 1.0, %v536_v21  ;;  %v544_v41 = vadd.f32 1.0, %v543_v28 }
 0x14e   : > { %v545_v62 = vmul.f32 %v544_v41, %v529_v6  ;;  %v554_v5 = vxor.u32 2147483648, %v537_v51 }
 0x150   : > { %v551_v2 = vxor.u32 2147483648, %v545_v62  ;;  %v555_v1 = vsel %vm553_vm9, %v554_v5, %v545_v62 }
 0x152   : > { %v552_v59 = vsel %vm550_vm8, %v537_v51, %v551_v2 }
 0x153   : > { %v556_v12 = vsel %vm549_vm10, %v552_v59, %v555_v1 }
 0x154   : > { %v557_v34 = vsel %vm546_vm11, nan, %v556_v12 }
 0x155   : > { %1116 = vmatmul.msk.f32.gmra.mxu0 %vm884_vm12, %v557_v34  ;;  %1120 = vmatmul.msk.f32.gmra.mxu1 %vm884_vm12, %v557_v34  ;;  %v974_v44 = vpop.permute.xlu2 %973 }
 0x156   : > { %v988_v3 = vsel %vm955_vm13, %v958_v20, %v974_v44 }
 0x15d   : > { %v986_v17 = vpop.permute.xlu2 %985 }
 0x15e   : > { %v991_v29 = vsel %vm955_vm13, %v970_v11, %v986_v17 }
 0x16b   : > { %v982_v57 = vpop.permute.xlu1 %981  ;;  %v978_v35 = vpop.permute.xlu0 %977 }
 0x16c   : > { %v990_v63 = vsel %vm955_vm13, %v966_v46, %v982_v57  ;;  %v989_v55 = vsel %vm955_vm13, %v962_v47, %v978_v35 }
 0x17c   : > { %v914_v52 = vpop.f32.mrf.mxu0  ;;  %v943_v9 = vpop.f32.mrf.mxu1 }
 0x17d   : > { %v992_v58 = vmul.f32 %v988_v3, %v914_v52 }
 0x17f   : > { %v996_v37 = vadd.f32 %v992_v58, %v943_v9 }
 0x181   : > { %1000 = vst [vmem:[%s1933_s24] sm:$0xff] %v996_v37 }
 0x19b   : > { %v920_v26 = vpop.f32.mrf.mxu2  ;;  %v949_v54 = vpop.f32.mrf.mxu3 }
 0x19c   : > { %v994_v7 = vmul.f32 %v990_v63, %v920_v26 }
 0x19e   : > { %v998_v4 = vadd.f32 %v994_v7, %v949_v54 }
 0x1a0   : > { %1002 = vst [vmem:[%s1933_s24 + $0x10] sm:$0xff] %v998_v4 }
 0x1aa   : > { %v923_v24 = vpop.f32.mrf.mxu2  ;;  %v952_v27 = vpop.f32.mrf.mxu3 }
 0x1ab   : > { %v995_v56 = vmul.f32 %v991_v29, %v923_v24 }
 0x1ad   : > { %v999_v49 = vadd.f32 %v995_v56, %v952_v27 }
 0x1af   : > { %1003 = vst [vmem:[%s1933_s24 + $0x18] sm:$0xff] %v999_v49 }
 0x1d2   : > { %v917_v33 = vpop.f32.mrf.mxu0  ;;  %v946_v60 = vpop.f32.mrf.mxu1 }
 0x1d3   : > { %v993_v10 = vmul.f32 %v989_v55, %v917_v33 }
 0x1d5   : > { %v997_v32 = vadd.f32 %v993_v10, %v946_v60 }
 0x1d7   : > { %1001 = vst [vmem:[%s1933_s24 + $0x8] sm:$0xff] %v997_v32 }
 0x1d8   : > { %1282 = shalt.err (!%p1279_p8)
}
 0x1d9   : > { %s1336_s11 = smov 128   ;;  %s1337_s17 = smov 8  }
 0x1da   : > { %1149 = dma.vmem_to_hbm [thread:$0]  (%p1396_p5), %s1018_s29, 512, %s1020_s30, %s1005_s16, %s1336_s11, %s1336_s11, %s1337_s17  }
 0x1db PF: > { %p1161_p9 = scmp.ge.s32.totalorder %s1321_s15, 2  ;;  %s1034_s19 = sand.u32 1, %s1309_s12  }
 0x1dc   : > { %s1035_s20 = scalar_lea.sflag [#allocation4], %s1034_s19 }
 0x1dd   : > { %p1156_p10 = pnand %p1161_p9, %p1400_p6 }
 0x1df   : > { %p1157_p11 = pneg %p1156_p10 }
 0x1e1   : > { %1304 = dma.done.wait (%p1157_p11), %s1035_s20, 512  }
 0x1e2   : > { %1306 = vsyncadd (%p1157_p11), %s1035_s20, 4294966784  ;;  %p14_p12 = scmp.ge.s32.totalorder %s1383_s18, 4   ;;  %s2000_s12 = smov %s1313_s13 }
 0x1e3   : > { %s2001_s13 = smov %s1317_s14  ;;  %s2002_s14 = smov %s1394_s21 }
 0x1e4   : > { %s2003_s15 = smov %s1383_s18  ;;  %16 = sbr.rel (!%p14_p12) target bundleno = 4 (0x4), region = 72 }
 0x1e9   :  { %1041 = vsyncpa [#allocation3], 1 }
 0x1ea   :  { %1043 = vsyncpa [#allocation3 + $0x1], 1 }
 0x1eb   :  { %1044 = vsyncpa [#allocation4], 1 }
 0x1ec   :  { %1046 = vsyncpa [#allocation4 + $0x1], 1 }

</bundles_post_ra>
